<compile_context>
chip_gen: v6e
topology: v6e:2x2x1
jax: 0.10.0
libtpu: 0.0.40
codegen_flags: <defaults>
</compile_context>

<pallas_src>
import math

import jax
import jax.numpy as jnp
from jax.experimental import pallas as pl
from jax.experimental.pallas import tpu as pltpu

IN_FEATURES = 28
HIDDEN = 32
OUT_FEATURES = 5
LANE = 128


def _round_up(x, m):
    return ((x + m - 1) // m) * m


def _cdiv(a, b):
    return -(-a // b)


def actor_kernel(xT_ref, w1_ref, b1_ref, w2_ref, b2_ref, oT_ref):
    # xT_ref: (28, TB)   w1_ref: (32, 28)  b1_ref: (32, 1)
    # w2_ref: (5, 32)    b2_ref: (5, 1)    oT_ref: (5, TB)
    xT = xT_ref[...]

    # hidden^T = ReLU(W1 @ x^T + b1)   -- batch on lanes, features on sublanes
    hT = jnp.dot(w1_ref[...], xT, preferred_element_type=jnp.float32) + b1_ref[...]
    hT = jnp.maximum(hT, 0.0)
    # TODO(synk): nn.Dropout(p=0.2) is identity at inference; training-mode
    # dropout (stateful PRNG mask + 1/(1-p) scale) is not reproduced here.

    # logits^T = W2 @ h^T + b2
    logitsT = (
        jnp.dot(w2_ref[...], hT, preferred_element_type=jnp.float32) + b2_ref[...]
    )

    # softmax over the feature axis (= sublane axis 0), per batch column.
    m = jnp.max(logitsT, axis=0, keepdims=True)
    e = jnp.exp(logitsT - m)
    s = jnp.sum(e, axis=0, keepdims=True)
    # exact reciprocal (approx=False) keeps ~1e-6 accuracy vs the reference.
    oT_ref[...] = e * pl.reciprocal(s, approx=False)


def actor_forward(x, w1, b1, w2, b2, *, block_b=2048):
    """x: (B, 28) f32; w1: (32, 28); b1: (32,); w2: (5, 32); b2: (5,).

    Returns softmax probabilities of shape (B, 5).
    """
    B = x.shape[0]

    # --- adaptive, lane-aligned batch tiling ------------------------------
    # TB must be a multiple of 128 (lane axis); cap it so VMEM stays tiny and
    # large batches produce >=2 grid steps (megacore + pipelining).  Split the
    # lane-aligned batch evenly across steps so padding waste is < TB rows.
    block_b = max(LANE, _round_up(min(block_b, 8192), LANE))
    B_lane = _round_up(B, LANE)
    max_tb = min(block_b, B_lane)
    n_steps = _cdiv(B_lane, max_tb)
    TB = _round_up(_cdiv(B_lane, n_steps), LANE)
    B_pad = n_steps * TB

    # Batch-on-lanes layout: transpose the tiny (B, 28) activations once in
    # the wrapper; padded zero columns produce benign softmax outputs and are
    # sliced off after the kernel.
    xT = x.T
    if B_pad != B:
        xT = jnp.pad(xT, ((0, 0), (0, B_pad - B)))

    b1c = b1.reshape(HIDDEN, 1)
    b2c = b2.reshape(OUT_FEATURES, 1)

    # Weights/biases: full-array blocks with constant index_map -> loaded once,
    # VMEM-resident across all grid steps.
    resident = lambda shape: pl.BlockSpec(shape, lambda i: (0, 0))

    cost = pl.CostEstimate(
        flops=2 * B_pad * (IN_FEATURES * HIDDEN + HIDDEN * OUT_FEATURES),
        transcendentals=B_pad * (OUT_FEATURES + 1),  # exp + reciprocal per row
        # bytes from the *unpadded* batch (padding is an artifact, not traffic
        # the outer scheduler should account for).
        bytes_accessed=(
            B * IN_FEATURES * 4
            + B * OUT_FEATURES * 4
            + w1.size * 4 + b1.size * 4 + w2.size * 4 + b2.size * 4
        ),
    )

    outT = pl.pallas_call(
        actor_kernel,
        out_shape=jax.ShapeDtypeStruct((OUT_FEATURES, B_pad), jnp.float32),
        grid_spec=pltpu.PrefetchScalarGridSpec(
            num_scalar_prefetch=0,
            grid=(n_steps,),
            in_specs=[
                pl.BlockSpec((IN_FEATURES, TB), lambda i: (0, i)),
                resident(w1.shape),
                resident(b1c.shape),
                resident(w2.shape),
                resident(b2c.shape),
            ],
            # Lane-dense output: batch on the 128-lane axis, no masked stores.
            out_specs=pl.BlockSpec((OUT_FEATURES, TB), lambda i: (0, i)),
        ),
        compiler_params=pltpu.CompilerParams(
            dimension_semantics=("parallel",),
        ),
        cost_estimate=cost,
    )(xT, w1, b1c, w2, b2c)

    return outT[:, :B].T  # back to (B, 5); tiny wrapper-side layout pass.


def init_params(key):
    # Matches Actor._init_param(), weights kept in native PyTorch layout:
    #   hidden[0].weight (32, 28) ~ Normal(0, sqrt(2 / in_features)), bias = 0
    #   out.weight (5, 32) = 0, out.bias = 1
    std = math.sqrt(2.0 / IN_FEATURES)
    w1 = std * jax.random.normal(key, (HIDDEN, IN_FEATURES), dtype=jnp.float32)
    b1 = jnp.zeros((HIDDEN,), dtype=jnp.float32)
    w2 = jnp.zeros((OUT_FEATURES, HIDDEN), dtype=jnp.float32)
    b2 = jnp.ones((OUT_FEATURES,), dtype=jnp.float32)
    return w1, b1, w2, b2


def _reference(x, w1, b1, w2, b2):
    h = jnp.maximum(x @ w1.T + b1, 0.0)
    return jax.nn.softmax(h @ w2.T + b2, axis=1)


if __name__ == "__main__":
    key = jax.random.PRNGKey(0)
    k_param, k_x1, k_x2 = jax.random.split(key, 3)

    w1, b1, w2, b2 = init_params(k_param)

    # Small shape consistent with the module (single grid step, padded lanes).
    B = 8
    x = jax.random.normal(k_x1, (B, IN_FEATURES), dtype=jnp.float32)
    out = jax.block_until_ready(actor_forward(x, w1, b1, w2, b2))
    ref = _reference(x, w1, b1, w2, b2)
    assert out.shape == (B, OUT_FEATURES)
    assert jnp.allclose(out, ref, atol=1e-6), "mismatch vs reference (B=8)"
    assert jnp.allclose(jnp.sum(out, axis=1), 1.0, atol=1e-6)

    # Exercise the multi-step grid + ragged-batch padding path:
    # B=300 with block_b=128 -> TB=128, 3 grid steps, 84 padded columns.
    B2 = 300
    x2 = jax.random.normal(k_x2, (B2, IN_FEATURES), dtype=jnp.float32)
    out2 = jax.block_until_ready(actor_forward(x2, w1, b1, w2, b2, block_b=128))
    ref2 = _reference(x2, w1, b1, w2, b2)
    assert out2.shape == (B2, OUT_FEATURES)
    assert jnp.allclose(out2, ref2, atol=1e-6), "mismatch vs reference (B=300)"
    assert jnp.allclose(jnp.sum(out2, axis=1), 1.0, atol=1e-6)

    print("KERNEL_OK")
</pallas_src>

<mosaic_0001>
module attributes {stable_mosaic.version = 11 : i64} {
  func.func @actor_kernel(%arg0: i32, %arg1: memref<28x128xf32, #tpu.memory_space<vmem>>, %arg2: memref<32x28xf32, #tpu.memory_space<vmem>>, %arg3: memref<32x1xf32, #tpu.memory_space<vmem>>, %arg4: memref<5x32xf32, #tpu.memory_space<vmem>>, %arg5: memref<5x1xf32, #tpu.memory_space<vmem>>, %arg6: memref<5x128xf32, #tpu.memory_space<vmem>>) attributes {dimension_semantics = [#tpu.dimension_semantics<parallel>], iteration_bounds = array<i64: 1>, scalar_prefetch = 0 : i64, scratch_operands = 0 : i64, tpu.core_type = #tpu.core_type<tc>, window_params = [{transform_indices = @transform_0, window_bounds = array<i64: 28, 128>}, {pipeline_mode = #tpu.pipeline_mode<synchronous>, transform_indices = @transform_1, window_bounds = array<i64: 32, 28>}, {pipeline_mode = #tpu.pipeline_mode<synchronous>, transform_indices = @transform_2, window_bounds = array<i64: 32, 1>}, {pipeline_mode = #tpu.pipeline_mode<synchronous>, transform_indices = @transform_3, window_bounds = array<i64: 5, 32>}, {pipeline_mode = #tpu.pipeline_mode<synchronous>, transform_indices = @transform_4, window_bounds = array<i64: 5, 1>}, {transform_indices = @transform_5, window_bounds = array<i64: 5, 128>}]} {
    %c0 = arith.constant 0 : index
    %c0_0 = arith.constant 0 : index
    %0 = vector.load %arg1[%c0, %c0_0] : memref<28x128xf32, #tpu.memory_space<vmem>>, vector<28x128xf32>
    %c0_1 = arith.constant 0 : index
    %c0_2 = arith.constant 0 : index
    %1 = vector.load %arg2[%c0_1, %c0_2] : memref<32x28xf32, #tpu.memory_space<vmem>>, vector<32x28xf32>
    %cst = arith.constant dense<0.000000e+00> : vector<32x128xf32>
    %2 = tpu.matmul %1, %0, %cst {dimension_numbers = #tpu.dot_dimension_numbers<[1], [0], [0], [1], [0, 0, 1, 1], [], []>} : vector<32x28xf32>, vector<28x128xf32>, vector<32x128xf32> -> vector<32x128xf32>
    %c0_3 = arith.constant 0 : index
    %c0_4 = arith.constant 0 : index
    %3 = vector.load %arg3[%c0_3, %c0_4] : memref<32x1xf32, #tpu.memory_space<vmem>>, vector<32x1xf32>
    %4 = vector.broadcast %3 : vector<32x1xf32> to vector<32x128xf32>
    %5 = arith.addf %2, %4 : vector<32x128xf32>
    %cst_5 = arith.constant 0.000000e+00 : f32
    %6 = vector.broadcast %cst_5 : f32 to vector<32x128xf32>
    %7 = arith.maximumf %5, %6 : vector<32x128xf32>
    %c0_6 = arith.constant 0 : index
    %c0_7 = arith.constant 0 : index
    %8 = vector.load %arg4[%c0_6, %c0_7] : memref<5x32xf32, #tpu.memory_space<vmem>>, vector<5x32xf32>
    %cst_8 = arith.constant dense<0.000000e+00> : vector<5x128xf32>
    %9 = tpu.matmul %8, %7, %cst_8 {dimension_numbers = #tpu.dot_dimension_numbers<[1], [0], [0], [1], [0, 0, 1, 1], [], []>} : vector<5x32xf32>, vector<32x128xf32>, vector<5x128xf32> -> vector<5x128xf32>
    %c0_9 = arith.constant 0 : index
    %c0_10 = arith.constant 0 : index
    %10 = vector.load %arg5[%c0_9, %c0_10] : memref<5x1xf32, #tpu.memory_space<vmem>>, vector<5x1xf32>
    %11 = vector.broadcast %10 : vector<5x1xf32> to vector<5x128xf32>
    %12 = arith.addf %9, %11 : vector<5x128xf32>
    %cst_11 = arith.constant dense<0xFF800000> : vector<128xf32>
    %13 = vector.multi_reduction <maximumf>, %12, %cst_11 [0] : vector<5x128xf32> to vector<128xf32>
    %14 = vector.shape_cast %13 : vector<128xf32> to vector<1x128xf32>
    %15 = vector.broadcast %14 : vector<1x128xf32> to vector<5x128xf32>
    %16 = arith.subf %12, %15 : vector<5x128xf32>
    %17 = math.exp %16 : vector<5x128xf32>
    %cst_12 = arith.constant dense<0.000000e+00> : vector<128xf32>
    %18 = vector.multi_reduction <add>, %17, %cst_12 [0] : vector<5x128xf32> to vector<128xf32>
    %19 = vector.shape_cast %18 : vector<128xf32> to vector<1x128xf32>
    %20 = tpu.reciprocal %19 : vector<1x128xf32> -> vector<1x128xf32>
    %21 = vector.broadcast %20 : vector<1x128xf32> to vector<5x128xf32>
    %22 = arith.mulf %17, %21 : vector<5x128xf32>
    %c0_13 = arith.constant 0 : index
    %c0_14 = arith.constant 0 : index
    %23 = vector.load %arg6[%c0_13, %c0_14] : memref<5x128xf32, #tpu.memory_space<vmem>>, vector<5x128xf32>
    tpu.vector_store %arg6[%c0_13, %c0_14], %22 {strides = array<i32>} : memref<5x128xf32, #tpu.memory_space<vmem>>, vector<5x128xf32>,
    return
  }
  func.func @transform_0(%arg0: i32) -> (i32, i32) {
    %c0_i32 = arith.constant 0 : i32
    %c0_i32_0 = arith.constant 0 : i32
    return %c0_i32, %arg0 : i32, i32
  }
  func.func @transform_1(%arg0: i32) -> (i32, i32) {
    %c0_i32 = arith.constant 0 : i32
    %c0_i32_0 = arith.constant 0 : i32
    %c0_i32_1 = arith.constant 0 : i32
    return %c0_i32, %c0_i32_0 : i32, i32
  }
  func.func @transform_2(%arg0: i32) -> (i32, i32) {
    %c0_i32 = arith.constant 0 : i32
    %c0_i32_0 = arith.constant 0 : i32
    %c0_i32_1 = arith.constant 0 : i32
    return %c0_i32, %c0_i32_0 : i32, i32
  }
  func.func @transform_3(%arg0: i32) -> (i32, i32) {
    %c0_i32 = arith.constant 0 : i32
    %c0_i32_0 = arith.constant 0 : i32
    %c0_i32_1 = arith.constant 0 : i32
    return %c0_i32, %c0_i32_0 : i32, i32
  }
  func.func @transform_4(%arg0: i32) -> (i32, i32) {
    %c0_i32 = arith.constant 0 : i32
    %c0_i32_0 = arith.constant 0 : i32
    %c0_i32_1 = arith.constant 0 : i32
    return %c0_i32, %c0_i32_0 : i32, i32
  }
  func.func @transform_5(%arg0: i32) -> (i32, i32) {
    %c0_i32 = arith.constant 0 : i32
    %c0_i32_0 = arith.constant 0 : i32
    return %c0_i32, %arg0 : i32, i32
  }
}

</mosaic_0001>

<bundles_post_ra>
// kernel: tpu_custom_call.1
= control target key start
LH: loop header
LB: loop body
LE: loop exit
PB: predicated region body
PF: predicated region fallthrough
CT: control target
= control target key end

     0   :  { %10 = vsyncpa [#allocation3], 0  ;;  %s468_s0 = inlined_call_operand.vmem [shape: f32[28,128], index: 0, kind: input, shape index: {}]   ;;  %s469_s1 = inlined_call_operand.hbm [shape: f32[32,28], index: 1, kind: input, shape index: {}]   ;;  %s470_s2 = inlined_call_operand.vmem [shape: f32[32,1], index: 2, kind: input, shape index: {}]   ;;  %s471_s3 = inlined_call_operand.vmem [shape: f32[5,32], index: 3, kind: input, shape index: {}]   ;;  %s472_s4 = inlined_call_operand.vmem [shape: f32[5,1], index: 4, kind: input, shape index: {}]   ;;  %s473_s5 = inlined_call_operand.hbm [shape: f32[5,128], index: 5, kind: output, shape index: {}]  }
   0x1   :  { %11 = vsyncpa [#allocation4], 0  ;;  %s391_s18 = smov [#allocation2]  }
   0x2   :  { %s19_s19 = sshll.u32 %s391_s18, 4  ;;  %s20_s19 = int_to_ptr.vmem [resolvable:$true] %s19_s19 }
   0x3   :  { %s355_s20 = scalar_lea.vmem %s20_s19, 512  ;;  %p360_p1 = scmp.lt.s32.totalorder %s20_s19, %s20_s19 }
   0x4   :  { %p356_p0 = scmp.ne.s32.totalorder %s20_s19, %s355_s20  ;;  %p361_p2 = scmp.lt.s32.totalorder %s355_s20, %s355_s20 }
   0x6   :  { %p362_p3 = por %p361_p2, %p360_p1 }
   0x8   :  { %p363_p4 = pnand %p362_p3, %p356_p0 }
   0xa   :  { %366 = shalt.err (!%p363_p4)
}
   0xb   :  { %s392_s21 = smov 128   ;;  %s393_s22 = smov 8  }
   0xc   :  { %25 = dma.hbm_to_vmem [thread:$0]  %s469_s1, 512, %s20_s19, [#allocation3], %s392_s21, %s392_s21, %s393_s22  }
   0xd   :  { %387 = dma.done.wait [#allocation3], 512  }
   0xe   :  { %388 = vsyncadd [#allocation3], 4294966784  ;;  %v394_v0 = vmov 0   ;;  %vm80_vm0 = vcmask 1043456   ;;  %vm67_vm1 = vcmask 228352   ;;  %v37_v2 = vld [vmem:[%s468_s0 + $0x10] sm:$0xff] }
   0xf   :  { %341 = vset.pattern.permute.xlu0 %v394_v0  ;;  %342 = vset.pattern.permute.xlu1 %v394_v0  ;;  %v38_v1 = vld [vmem:[%s468_s0 + $0x18] sm:$0xf]  ;;  %v39_v3 = vld [vmem:[#allocation2] sm:$0xff]  ;;  %v36_v4 = vld [vmem:[%s468_s0 + $0x8] sm:$0xff]  ;;  %v395_v14 = vmov 0.0   ;;  %vm396_vm2 = vmmov 0  }
  0x10   :  { %309 = vmatprep.subr.msk.mxu0 %vm80_vm0, %v38_v1  ;;  %317 = vmatprep.mubr.msk.f32.mxu0 %vm67_vm1, %v39_v3  ;;  %v46_v5 = vld [vmem:[%s470_s2 + $0x18] sm:$0xff]  ;;  %v44_v6 = vld [vmem:[%s470_s2 + $0x8] sm:$0xff]  ;;  %v35_v7 = vld [vmem:[%s468_s0] sm:$0xff]  ;;  %vm180_vm3 = vcmask 261120   ;;  %vm254_vm4 = vcmask 1044480  }
  0x11   :  { %310 = vmatpush3.msk.msra.mxu0 %vm80_vm0, %v38_v1  ;;  %64 = vperm.xlu0 %341, %v46_v5   ;;  %v45_v8 = vld [vmem:[%s470_s2 + $0x10] sm:$0xff]  ;;  %v43_v9 = vld [vmem:[%s470_s2] sm:$0xff]  ;;  %v40_v10 = vld [vmem:[#allocation2 + $0x8] sm:$0xff] }
  0x12   :  { %311 = vmatprep.subr.mxu0 %v37_v2  ;;  %54 = vperm.xlu1 %342, %v44_v6   ;;  %v41_v11 = vld [vmem:[#allocation2 + $0x10] sm:$0xff]  ;;  %v174_v12 = vld [vmem:[%s472_s4] sm:$0x1f]  ;;  %v42_v13 = vld [vmem:[#allocation2 + $0x18] sm:$0xff] }
  0x13   :  { %312 = vmatpush3.msra.mxu0 %v37_v2  ;;  %323 = vmatprep.subr.mxu1 %v395_v14  ;;  %v173_v31 = vld [vmem:[%s471_s3] sm:$0x1f]  ;;  %s397_s3 = smov [#allocation5]  }
  0x14   :  { %313 = vmatprep.subr.mxu0 %v36_v4  ;;  %331 = vmatprep.mubr.msk.f32.mxu1 %vm396_vm2, %v395_v14  ;;  %s281_s4 = sshll.u32 %s397_s3, 4  ;;  %s282_s4 = int_to_ptr.vmem [resolvable:$true] %s281_s4 }
  0x15   :  { %314 = vmatpush3.msra.mxu0 %v36_v4  ;;  %59 = vperm.xlu0 %341, %v45_v8   ;;  %s367_s17 = scalar_lea.vmem %s282_s4, 128  ;;  %p372_p6 = scmp.lt.s32.totalorder %s282_s4, %s282_s4 }
  0x16   :  { %315 = vmatprep.subr.mxu0 %v35_v7  ;;  %49 = vperm.xlu1 %342, %v43_v9   ;;  %p368_p5 = scmp.ne.s32.totalorder %s282_s4, %s367_s17  ;;  %p373_p7 = scmp.lt.s32.totalorder %s367_s17, %s367_s17 }
  0x17   :  { %316 = vmatpush3.msra.mxu0 %v35_v7 }
  0x18   :  { %318 = vmatmul.mubr.msk.f32.vlgmr.msra.gmra.mxu0 %vm67_vm1, %v40_v10  ;;  %p374_p8 = por %p373_p7, %p372_p6 }
  0x19   :  { %320 = vmatprep.mubr.msk.f32.mxu0 %vm67_vm1, %v41_v11  ;;  %177 = vperm.xlu0 %341, %v174_v12  }
  0x1a   :  { %p375_p9 = pnand %p374_p8, %p368_p5 }
  0x1c   :  { %321 = vmatmul.mubr.msk.f32.gmra.mxu0 %vm67_vm1, %v42_v13 }
  0x8c   :  { %v65_v15 = vpop.permute.xlu0 %64 }
  0x8d   :  { %v55_v16 = vpop.permute.xlu1 %54 }
  0x90   :  { %v60_v20 = vpop.permute.xlu0 %59 }
  0x91   :  { %v50_v22 = vpop.permute.xlu1 %49 }
  0x94   :  { %v178_v32 = vpop.permute.xlu0 %177 }
  0xd8   :  { %v319_v17 = vpop.f32.mrf.mxu0 }
  0xd9   :  { %v156_v24 = vadd.f32 %v319_v17, %v55_v16 }
  0xda   :  { %v150_v18 = vpop.f32.mrf.mxu0 }
  0xdb   :  { %v151_v27 = vadd.f32 %v150_v18, %v50_v22  ;;  %v170_v29 = vmax.f32 %v156_v24, 0.0 }
  0xdc   :  { %v322_v19 = vpop.f32.mrf.mxu0 }
  0xdd   :  { %v166_v21 = vadd.f32 %v322_v19, %v65_v15  ;;  %v169_v30 = vmax.f32 %v151_v27, 0.0 }
  0xde   :  { %v160_v23 = vpop.f32.mrf.mxu0 }
  0xdf   :  { %v172_v25 = vmax.f32 %v166_v21, 0.0  ;;  %v161_v26 = vadd.f32 %v160_v23, %v60_v20 }
  0xe1   :  { %v171_v28 = vmax.f32 %v161_v26, 0.0  ;;  %324 = vmatpush3.msra.mxu1 %v172_v25 }
  0xe2   :  { %325 = vmatprep.subr.mxu1 %v395_v14 }
  0xe3   :  { %326 = vmatpush3.msra.mxu1 %v171_v28 }
  0xe4   :  { %327 = vmatprep.subr.mxu1 %v395_v14 }
  0xe5   :  { %328 = vmatpush3.msra.mxu1 %v170_v29 }
  0xe6   :  { %329 = vmatprep.subr.mxu1 %v395_v14 }
  0xe7   :  { %330 = vmatpush3.msra.mxu1 %v169_v30 }
  0xe8   :  { %332 = vmatmul.mubr.msk.f32.vlgmr.msra.gmra.mxu1 %vm180_vm3, %v173_v31 }
 0x1a8   :  { %v250_v33 = vpop.f32.mrf.mxu1 }
 0x1a9   :  { %v251_v34 = vadd.f32 %v250_v33, %v178_v32 }
 0x1aa   :  { %v333_v35 = vpop.f32.mrf.mxu1 }
 0x1ab   :  { %v255_v36 = vsel %vm254_vm4, %v251_v34, -inf }
 0x1ac   :  { %v256_v37 = vrot.slane %v255_v36, 4 }
 0x1ae   :  { %v257_v38 = vmax.f32 %v255_v36, %v256_v37 }
 0x1b0   :  { %v258_v39 = vrot.slane %v257_v38, 2 }
 0x1b2   :  { %v259_v40 = vmax.f32 %v257_v38, %v258_v39 }
 0x1b4   :  { %v260_v41 = vrot.slane %v259_v40, 1 }
 0x1b6   :  { %v261_v42 = vmax.f32 %v259_v40, %v260_v41 }
 0x1b8   :  { %v262_v43 = vsub.f32 %v251_v34, %v261_v42 }
 0x1ba   :  { %v263_v44 = vmul.f32 1.442695, %v262_v43 }
 0x1bc   :  { %343 = vpow2.f32 %v263_v44 }
 0x1c9   :  { %v344_v45 = vpop.eup %343 }
 0x1ca   :  { %v265_v46 = vsel %vm254_vm4, %v344_v45, 0.0 }
 0x1cb   :  { %v266_v47 = vrot.slane %v265_v46, 4 }
 0x1cd   :  { %v267_v48 = vadd.f32 %v266_v47, %v265_v46 }
 0x1cf   :  { %v268_v49 = vrot.slane %v267_v48, 2 }
 0x1d1   :  { %v269_v50 = vadd.f32 %v268_v49, %v267_v48 }
 0x1d3   :  { %v270_v51 = vrot.slane %v269_v50, 1 }
 0x1d5   :  { %v271_v52 = vadd.f32 %v270_v51, %v269_v50 }
 0x1d7   :  { %345 = vrcp.f32 %v271_v52 }
 0x1e4   :  { %v346_v53 = vpop.eup %345 }
 0x1e5   :  { %v273_v54 = vmul.f32 %v346_v53, %v344_v45 }
 0x1e7   :  { %274 = vst [vmem:[#allocation5] sm:$0x1f] %v273_v54 }
 0x1e8   :  { %378 = shalt.err (!%p375_p9)
}
 0x1e9   :  { %284 = dma.vmem_to_hbm [thread:$0]  %s282_s4, 128, %s473_s5, [#allocation4]  }
 0x1ea   :  { %389 = dma.done.wait [#allocation4], 128  }
 0x1eb   :  { %390 = vsyncadd [#allocation4], 4294967168 }
 0x1ec   :  { %288 = vsyncpa [#allocation3], 1 }
 0x1ed   :  { %289 = vsyncpa [#allocation4], 1 }

</bundles_post_ra>
